<compile_context>
chip_gen: v7x
topology: tpu7x:2x2x1
jax: 0.10.0
libtpu: 0.0.40
codegen_flags: <defaults>
</compile_context>

<pallas_src>
import math

import numpy as np
import jax
import jax.numpy as jnp
from jax.experimental import pallas as pl
from jax.experimental.pallas import tpu as pltpu


def _round_up(n, m):
    return (n + m - 1) // m * m


def _vmem_plan():
    """Per-generation (stream+scratch tile budget, scoped-VMEM limit)."""
    try:
        cap = int(pltpu.get_tpu_info().vmem_capacity_bytes)
    except Exception:
        cap = 0
    if cap and cap <= (64 << 20):        # v7x-class: 64 MiB per TensorCore
        return 16 << 20, 40 << 20
    if cap >= (96 << 20):                # v5e / v6e: 128 MiB physical VMEM
        return 24 << 20, 64 << 20
    return 12 << 20, 32 << 20            # unknown chip: stay conservative


def _choose_p_tile(K, Cin, Cout, P, B, budget_bytes):
    """Largest lane-aligned spatial tile whose double-buffered streams plus
    in-kernel f32 blend scratch fit the per-generation VMEM budget, while
    keeping enough grid steps for the software pipeline (and the megacore
    split of the two "parallel" grid axes on multi-TC chips)."""
    stream = 2 * (4 * K * Cin * 2 + 4 * K * 2 + Cout * 4)   # bf16 vals+wts, f32 out
    scratch = 4 * K * Cin * 10 + Cout * 4                   # f32 blend intermediates
    per_col = stream + scratch
    tp = max(128, budget_bytes // per_col // 128 * 128)
    tp = int(min(2048, tp, _round_up(P, 128)))
    while tp > 128 and B * pl.cdiv(P, tp) < 8:
        tp -= 128
    return tp


# ----------------------------------------------------------------------------
# Pallas kernel (per (batch, spatial-tile) block):
#   1) expand the per-(corner,tap) blend weights across Cin with an exact
#      one-hot matmul on the MXU (avoids any sublane relayout),
#   2) blend the gathered corner values on the VPU in f32,
#   3) one deep bf16 MXU matmul (Cout, 4*K*Cin) x (4*K*Cin, tp) does the
#      corner sum + tap/channel contraction with f32 accumulation.
# ----------------------------------------------------------------------------
def _deform_conv_kernel(v_ref, w_ref, e_ref, cw_ref, b_ref, o_ref):
    # v_ref[0] : (4*K*Cin, tp) bf16  gathered corner values, row = j*Cin*K + c*K + k
    # w_ref[0] : (4*K,     tp) bf16  bilinear*mask blend weights, row = j*K + k
    # e_ref    : (4*K*Cin, 4*K) bf16 one-hot Cin-expansion matrix (exact 0/1)
    # cw_ref   : (Cout, 4*K*Cin) bf16 conv weight tiled 4x over corners
    # b_ref    : (Cout, 1) f32 bias
    v = v_ref[0].astype(jnp.float32)
    w_exp = jnp.dot(e_ref[...], w_ref[0],
                    preferred_element_type=jnp.float32)        # (4KCin, tp) exact
    blended = (v * w_exp).astype(jnp.bfloat16)                 # bf16 MXU operand
    acc = jnp.dot(cw_ref[...], blended,
                  preferred_element_type=jnp.float32)          # (Cout, tp)
    o_ref[0] = (acc + b_ref[...]).astype(o_ref.dtype)


# ----------------------------------------------------------------------------
# Wrapper: index / bilinear-weight setup + corner gather in plain JAX (glue),
# hot blend + fused matmul in the Pallas kernel, tiled over (batch, spatial).
# ----------------------------------------------------------------------------
def depth_deform_conv(x, depth, offset, mask, weight, bias, *,
                      stride=(1, 1), padding=(1, 1), dilation=(1, 1),
                      groups=1, deformable_groups=1):
    # DepthOffset in the reference always returns zeros (it overwrites its
    # computed offset), so `depth` has no effect on the output.
    del depth
    assert groups == 1 and deformable_groups == 1
    B, Cin, H, W = x.shape
    Cout, _, kh, kw = weight.shape
    K = kh * kw
    assert offset.shape[1] == 2 * deformable_groups * K
    assert mask.shape[1] == deformable_groups * K

    sh, sw = stride
    ph, pw = padding
    dh, dw = dilation
    outH = (H + 2 * ph - dh * (kh - 1) - 1) // sh + 1
    outW = (W + 2 * pw - dw * (kw - 1) - 1) // sw + 1
    P = outH * outW

    # --- sampling positions per (b, k, ho, wo) -------------------------------
    kidx = jnp.arange(K)
    ky = (kidx // kw).astype(jnp.float32) * dh                   # (K,)
    kx = (kidx % kw).astype(jnp.float32) * dw
    base_y = jnp.arange(outH, dtype=jnp.float32) * sh - ph       # (outH,)
    base_x = jnp.arange(outW, dtype=jnp.float32) * sw - pw       # (outW,)
    y = (ky[:, None, None] + base_y[None, :, None])[None] + offset[:, 0::2]
    xs = (kx[:, None, None] + base_x[None, None, :])[None] + offset[:, 1::2]
    # each (B, K, outH, outW); depth-offset contribution is provably zero.

    h0 = jnp.floor(y)
    w0 = jnp.floor(xs)
    lh, lw = y - h0, xs - w0
    hh, hw = 1.0 - lh, 1.0 - lw

    def corner(hc, wc, bw):
        valid = (hc >= 0) & (hc < H) & (wc >= 0) & (wc < W)
        idx = (jnp.clip(hc, 0, H - 1).astype(jnp.int32) * W
               + jnp.clip(wc, 0, W - 1).astype(jnp.int32))       # (B,K,outH,outW)
        wt = jnp.where(valid, bw, 0.0) * mask                    # fold modulation
        return idx.reshape(B, K, P), wt.reshape(B, K, P)

    i00, wt00 = corner(h0,     w0,     hh * hw)
    i01, wt01 = corner(h0,     w0 + 1, hh * lw)
    i10, wt10 = corner(h0 + 1, w0,     lh * hw)
    i11, wt11 = corner(h0 + 1, w0 + 1, lh * lw)

    idx_all = jnp.stack([i00, i01, i10, i11], axis=1)            # (B,4,K,P) i32
    wt_all = jnp.stack([wt00, wt01, wt10, wt11], axis=1)         # (B,4,K,P) f32

    # TODO(synk): the data-dependent bilinear corner gather stays in plain XLA
    # (jnp.take); a fully in-kernel gather needs per-lane dynamic-gather / DMA
    # gather support that has no clean BlockSpec equivalent.
    x_flat = x.reshape(B, Cin, H * W)
    vals = jax.vmap(lambda xf, ii: jnp.take(xf, ii, axis=1))(
        x_flat, idx_all.reshape(B, 4 * K * P))                   # (B, Cin, 4K*P)
    # dense-sublane value slab: row r = j*(Cin*K) + c*K + k
    vals = (vals.reshape(B, Cin, 4, K, P)
                .transpose(0, 2, 1, 3, 4)
                .reshape(B, 4 * Cin * K, P))
    wts = wt_all.reshape(B, 4 * K, P)                            # row q = j*K + k

    # --- lane-aligned spatial tiling + per-generation VMEM plan --------------
    budget, vmem_limit = _vmem_plan()
    tp = _choose_p_tile(K, Cin, Cout, P, B, budget)
    P_pad = _round_up(P, tp)
    pad = P_pad - P
    vals = jnp.pad(vals, ((0, 0), (0, 0), (0, pad))).astype(jnp.bfloat16)
    wts = jnp.pad(wts, ((0, 0), (0, 0), (0, pad))).astype(jnp.bfloat16)

    # exact one-hot Cin-expansion: E[j*Cin*K + c*K + k, j*K + k] = 1
    r = np.arange(4 * Cin * K)
    e_np = np.zeros((4 * Cin * K, 4 * K), np.float32)
    e_np[r, (r // (Cin * K)) * K + (r % K)] = 1.0
    expand = jnp.asarray(e_np, dtype=jnp.bfloat16)

    # conv weight flattened to (Cout, Cin*K) [col = c*K + k], tiled over corners
    cw = weight.reshape(Cout, Cin * K).astype(jnp.bfloat16)
    cw_big = jnp.tile(cw, (1, 4))                                # (Cout, 4*Cin*K)
    b2 = bias.reshape(Cout, 1).astype(jnp.float32)

    grid = (B, P_pad // tp)
    out = pl.pallas_call(
        _deform_conv_kernel,
        out_shape=jax.ShapeDtypeStruct((B, Cout, P_pad), jnp.float32),
        grid=grid,
        in_specs=[
            pl.BlockSpec((1, 4 * Cin * K, tp), lambda b, p: (b, 0, p)),
            pl.BlockSpec((1, 4 * K, tp), lambda b, p: (b, 0, p)),
            pl.BlockSpec((4 * Cin * K, 4 * K), lambda b, p: (0, 0)),  # VMEM-resident
            pl.BlockSpec((Cout, 4 * Cin * K), lambda b, p: (0, 0)),   # VMEM-resident
            pl.BlockSpec((Cout, 1), lambda b, p: (0, 0)),             # VMEM-resident
        ],
        out_specs=pl.BlockSpec((1, Cout, tp), lambda b, p: (b, 0, p)),
        compiler_params=pltpu.CompilerParams(
            dimension_semantics=("parallel", "parallel"),
            vmem_limit_bytes=vmem_limit),
    )(vals, wts, expand, cw_big, b2)

    return out[:, :, :P].reshape(B, Cout, outH, outW)


# ----------------------------------------------------------------------------
# Independent NumPy reference for modulated deformable conv (DCNv2 semantics).
# ----------------------------------------------------------------------------
def _reference_dcnv2_numpy(x, offset, mask, weight, bias, stride, padding, dilation):
    x = np.asarray(x, np.float64)
    offset = np.asarray(offset, np.float64)
    mask = np.asarray(mask, np.float64)
    weight = np.asarray(weight, np.float64)
    bias = np.asarray(bias, np.float64)
    B, Cin, H, W = x.shape
    Cout, _, kh, kw = weight.shape
    sh, sw = stride
    ph, pw = padding
    dh, dw = dilation
    outH = (H + 2 * ph - dh * (kh - 1) - 1) // sh + 1
    outW = (W + 2 * pw - dw * (kw - 1) - 1) // sw + 1
    out = np.tile(bias.reshape(1, Cout, 1, 1), (B, 1, outH, outW))
    gy = np.arange(outH)[:, None] * sh - ph
    gx = np.arange(outW)[None, :] * sw - pw
    for b in range(B):
        for ki in range(kh):
            for kj in range(kw):
                k = ki * kw + kj
                py = gy + ki * dh + offset[b, 2 * k]
                px = gx + kj * dw + offset[b, 2 * k + 1]
                h0 = np.floor(py)
                w0 = np.floor(px)
                lh, lw = py - h0, px - w0
                sample = np.zeros((Cin, outH, outW))
                for dy, dx, bw in ((0, 0, (1 - lh) * (1 - lw)),
                                   (0, 1, (1 - lh) * lw),
                                   (1, 0, lh * (1 - lw)),
                                   (1, 1, lh * lw)):
                    hc, wc = h0 + dy, w0 + dx
                    valid = (hc >= 0) & (hc < H) & (wc >= 0) & (wc < W)
                    hcl = np.clip(hc, 0, H - 1).astype(np.int64)
                    wcl = np.clip(wc, 0, W - 1).astype(np.int64)
                    sample += np.where(valid, bw, 0.0)[None] * x[b][:, hcl, wcl]
                sample *= mask[b, k][None]
                out[b] += np.tensordot(weight[:, :, ki, kj], sample, axes=([1], [0]))
    return out


if __name__ == "__main__":
    # module hyper-parameters (small demo shapes)
    B, Cin, Cout = 2, 4, 8
    H = W = 16
    kh = kw = 3
    stride, padding, dilation = (1, 1), (1, 1), (1, 1)
    K = kh * kw
    outH = (H + 2 * padding[0] - dilation[0] * (kh - 1) - 1) // stride[0] + 1
    outW = (W + 2 * padding[1] - dilation[1] * (kw - 1) - 1) // stride[1] + 1

    key = jax.random.PRNGKey(0)
    kwt, kb, kxi, kd, ko, km = jax.random.split(key, 6)

    # deterministic parameter init (matches PyTorch kaiming_uniform_(a=sqrt(5)))
    fan_in = Cin * kh * kw
    bound = 1.0 / math.sqrt(fan_in)
    weight = jax.random.uniform(kwt, (Cout, Cin, kh, kw), jnp.float32, -bound, bound)
    bias = jax.random.uniform(kb, (Cout,), jnp.float32, -bound, bound)

    # inputs
    x = jax.random.normal(kxi, (B, Cin, H, W), jnp.float32)
    depth = jax.random.uniform(kd, (B, 1, H, W), jnp.float32)
    offset = 1.5 * jax.random.normal(ko, (B, 2 * K, outH, outW), jnp.float32)
    mask = jax.nn.sigmoid(jax.random.normal(km, (B, K, outH, outW), jnp.float32))

    out = depth_deform_conv(x, depth, offset, mask, weight, bias,
                            stride=stride, padding=padding, dilation=dilation)
    out = jax.block_until_ready(out)

    # silent numerical check against an independent NumPy DCNv2 reference
    ref = _reference_dcnv2_numpy(x, offset, mask, weight, bias,
                                 stride, padding, dilation)
    np.testing.assert_allclose(np.asarray(out), ref, rtol=2e-2, atol=2e-2)

    print("KERNEL_OK")
</pallas_src>

<mosaic_0001>
module attributes {stable_mosaic.version = 11 : i64} {
  func.func @_deform_conv_kernel(%arg0: i32, %arg1: i32, %arg2: memref<1x144x128xbf16, #tpu.memory_space<vmem>>, %arg3: memref<1x36x128xbf16, #tpu.memory_space<vmem>>, %arg4: memref<144x36xbf16, #tpu.memory_space<vmem>>, %arg5: memref<8x144xbf16, #tpu.memory_space<vmem>>, %arg6: memref<8x1xf32, #tpu.memory_space<vmem>>, %arg7: memref<1x8x128xf32, #tpu.memory_space<vmem>>) attributes {dimension_semantics = [#tpu.dimension_semantics<parallel>, #tpu.dimension_semantics<parallel>], iteration_bounds = array<i64: 2, 2>, scalar_prefetch = 0 : i64, scratch_operands = 0 : i64, tpu.core_type = #tpu.core_type<tc>, window_params = [{transform_indices = @transform_0, window_bounds = array<i64: 1, 144, 128>}, {transform_indices = @transform_1, window_bounds = array<i64: 1, 36, 128>}, {pipeline_mode = #tpu.pipeline_mode<synchronous>, transform_indices = @transform_2, window_bounds = array<i64: 144, 36>}, {pipeline_mode = #tpu.pipeline_mode<synchronous>, transform_indices = @transform_3, window_bounds = array<i64: 8, 144>}, {pipeline_mode = #tpu.pipeline_mode<synchronous>, transform_indices = @transform_4, window_bounds = array<i64: 8, 1>}, {transform_indices = @transform_5, window_bounds = array<i64: 1, 8, 128>}]} {
    %c0 = arith.constant 0 : index
    %c0_0 = arith.constant 0 : index
    %c0_1 = arith.constant 0 : index
    %0 = vector.load %arg2[%c0, %c0_0, %c0_1] : memref<1x144x128xbf16, #tpu.memory_space<vmem>>, vector<1x144x128xbf16>
    %1 = vector.shape_cast %0 : vector<1x144x128xbf16> to vector<144x128xbf16>
    %2 = arith.extf %1 : vector<144x128xbf16> to vector<144x128xf32>
    %c0_2 = arith.constant 0 : index
    %c0_3 = arith.constant 0 : index
    %3 = vector.load %arg4[%c0_2, %c0_3] : memref<144x36xbf16, #tpu.memory_space<vmem>>, vector<144x36xbf16>
    %c0_4 = arith.constant 0 : index
    %c0_5 = arith.constant 0 : index
    %c0_6 = arith.constant 0 : index
    %4 = vector.load %arg3[%c0_4, %c0_5, %c0_6] : memref<1x36x128xbf16, #tpu.memory_space<vmem>>, vector<1x36x128xbf16>
    %5 = vector.shape_cast %4 : vector<1x36x128xbf16> to vector<36x128xbf16>
    %cst = arith.constant dense<0.000000e+00> : vector<144x128xf32>
    %6 = tpu.matmul %3, %5, %cst {dimension_numbers = #tpu.dot_dimension_numbers<[1], [0], [0], [1], [0, 0, 1, 1], [], []>} : vector<144x36xbf16>, vector<36x128xbf16>, vector<144x128xf32> -> vector<144x128xf32>
    %7 = arith.mulf %2, %6 : vector<144x128xf32>
    %8 = arith.truncf %7 : vector<144x128xf32> to vector<144x128xbf16>
    %c0_7 = arith.constant 0 : index
    %c0_8 = arith.constant 0 : index
    %9 = vector.load %arg5[%c0_7, %c0_8] : memref<8x144xbf16, #tpu.memory_space<vmem>>, vector<8x144xbf16>
    %cst_9 = arith.constant dense<0.000000e+00> : vector<8x128xf32>
    %10 = tpu.matmul %9, %8, %cst_9 {dimension_numbers = #tpu.dot_dimension_numbers<[1], [0], [0], [1], [0, 0, 1, 1], [], []>} : vector<8x144xbf16>, vector<144x128xbf16>, vector<8x128xf32> -> vector<8x128xf32>
    %c0_10 = arith.constant 0 : index
    %c0_11 = arith.constant 0 : index
    %11 = vector.load %arg6[%c0_10, %c0_11] : memref<8x1xf32, #tpu.memory_space<vmem>>, vector<8x1xf32>
    %12 = vector.broadcast %11 : vector<8x1xf32> to vector<8x128xf32>
    %13 = arith.addf %10, %12 : vector<8x128xf32>
    %c0_12 = arith.constant 0 : index
    %c0_13 = arith.constant 0 : index
    %c0_14 = arith.constant 0 : index
    %14 = vector.load %arg7[%c0_12, %c0_13, %c0_14] : memref<1x8x128xf32, #tpu.memory_space<vmem>>, vector<1x8x128xf32>
    %15 = vector.shape_cast %14 : vector<1x8x128xf32> to vector<8x128xf32>
    %16 = vector.shape_cast %13 : vector<8x128xf32> to vector<1x8x128xf32>
    tpu.vector_store %arg7[%c0_12, %c0_13, %c0_14], %16 {strides = array<i32>} : memref<1x8x128xf32, #tpu.memory_space<vmem>>, vector<1x8x128xf32>,
    return
  }
  func.func @transform_0(%arg0: i32, %arg1: i32) -> (i32, i32, i32) {
    %c0_i32 = arith.constant 0 : i32
    %c0_i32_0 = arith.constant 0 : i32
    return %arg0, %c0_i32, %arg1 : i32, i32, i32
  }
  func.func @transform_1(%arg0: i32, %arg1: i32) -> (i32, i32, i32) {
    %c0_i32 = arith.constant 0 : i32
    %c0_i32_0 = arith.constant 0 : i32
    return %arg0, %c0_i32, %arg1 : i32, i32, i32
  }
  func.func @transform_2(%arg0: i32, %arg1: i32) -> (i32, i32) {
    %c0_i32 = arith.constant 0 : i32
    %c0_i32_0 = arith.constant 0 : i32
    %c0_i32_1 = arith.constant 0 : i32
    return %c0_i32, %c0_i32_0 : i32, i32
  }
  func.func @transform_3(%arg0: i32, %arg1: i32) -> (i32, i32) {
    %c0_i32 = arith.constant 0 : i32
    %c0_i32_0 = arith.constant 0 : i32
    %c0_i32_1 = arith.constant 0 : i32
    return %c0_i32, %c0_i32_0 : i32, i32
  }
  func.func @transform_4(%arg0: i32, %arg1: i32) -> (i32, i32) {
    %c0_i32 = arith.constant 0 : i32
    %c0_i32_0 = arith.constant 0 : i32
    %c0_i32_1 = arith.constant 0 : i32
    return %c0_i32, %c0_i32_0 : i32, i32
  }
  func.func @transform_5(%arg0: i32, %arg1: i32) -> (i32, i32, i32) {
    %c0_i32 = arith.constant 0 : i32
    %c0_i32_0 = arith.constant 0 : i32
    return %arg0, %c0_i32, %arg1 : i32, i32, i32
  }
}

</mosaic_0001>

<bundles_post_ra>
// kernel: tpu_custom_call.1
= control target key start
LH: loop header
LB: loop body
LE: loop exit
PB: predicated region body
PF: predicated region fallthrough
CT: control target
= control target key end

     0   :  { %s1479_s0 = inlined_call_operand.hbm [shape: bf16[2,144,256], index: 0, kind: input, shape index: {}]   ;;  %s1480_s1 = inlined_call_operand.vmem [shape: bf16[2,36,256], index: 1, kind: input, shape index: {}]   ;;  %s1481_s2 = inlined_call_operand.vmem [shape: bf16[144,36], index: 2, kind: input, shape index: {}]   ;;  %s1482_s3 = inlined_call_operand.vmem [shape: bf16[8,144], index: 3, kind: input, shape index: {}]   ;;  %s1483_s4 = inlined_call_operand.vmem [shape: f32[8,1], index: 4, kind: input, shape index: {}]   ;;  %s1484_s5 = inlined_call_operand.hbm [shape: f32[2,8,256], index: 5, kind: output, shape index: {}]  }
   0x1   :  { %1489 = sst [smem:[#allocation13_spill]] %s1479_s0 }
   0x2   :  { %10 = vsyncpa [#allocation3], 0 }
   0x3   :  { %12 = vsyncpa [#allocation3 + $0x1], 0 }
   0x4   :  { %13 = vsyncpa [#allocation4], 0 }
   0x5   :  { %15 = vsyncpa [#allocation4 + $0x1], 0  ;;  %s1205_s18 = smov 0   ;;  %s1207_s19 = smov 0  }
   0x6   :  { %s1209_s20 = smov 0   ;;  %s1211_s21 = smov 0  }
   0x7   :  { %s1213_s22 = smov 0   ;;  %s1215_s23 = smov 0  }
   0x8   :  { %s1217_s24 = smov 0   ;;  %s1219_s25 = smov 0  }
   0x9 LB: > { %1490 = sst [smem:[#allocation9_spill]] %s1145_s20  ;;  %s804_s26 = sadd.s32 4294967295, %s1165_s25   ;;  %s1165_s25 = sphi %s1219_s25, %s21_s25   ;;  %s1161_s24 = sphi %s1217_s24, %s1510_s24   ;;  %s1157_s23 = sphi %s1215_s23, %s1509_s23   ;;  %s1153_s22 = sphi %s1213_s22, %s1508_s22   ;;  %s1149_s21 = sphi %s1211_s21, %s1507_s21   ;;  %s1145_s20 = sphi %s1209_s20, %s1502_s20   ;;  %s1141_s19 = sphi %s1207_s19, %s1506_s19   ;;  %s1137_s18 = sphi %s1205_s18, %s1505_s18  }
   0xa   : > { %s805_s27 = sadd.s32 4294967294, %s1165_s25   ;;  %s30_s28 = sadd.s32 1, %s1157_s23 }
   0xb   : > { %p31_p0 = scmp.ge.s32.totalorder %s30_s28, 2  ;;  %s33_s29 = sadd.s32 1, %s1161_s24 }
   0xc   : > { %p49_p1 = scmp.ne.s32.totalorder %s1145_s20, %s1141_s19  ;;  %p50_p2 = scmp.eq.s32.totalorder %s1165_s25, 0 }
   0xd   : > { %s1512_s28 = smov (%p31_p0, %s30_s28), 0  ;;  %s1514_s29 = smov (!%p31_p0, %s33_s29), %s1161_s24 }
   0xe   : > { %1491 = sst [smem:[#allocation10_spill]] %s1512_s28  ;;  %s38_s30 = ssub.s32 %s1157_s23, %s1512_s28 }
   0xf   : > { %p1257_p3 = por %p50_p2, %p49_p1  ;;  %p35_p4 = scmp.ge.s32.totalorder %s1514_s29, 2 }
  0x10   : > { %p55_p5 = scmp.ne.s32.totalorder %s1141_s19, %s1137_s18  ;;  %p56_p6 = scmp.eq.s32.totalorder %s804_s26, 0 }
  0x11   : > { %p172_p7 = scmp.eq.s32.totalorder %s804_s26, 3  ;;  %s1516_s29 = smov (%p35_p4, %s1514_s29), 0 }
  0x12   : > { %1493 = sst [smem:[#allocation11_spill]] %s1516_s29  ;;  %p1265_p8 = por %p56_p6, %p55_p5 }
  0x13   : > { %p1269_p9 = por %p172_p7, %p49_p1  ;;  %s37_s9 = ssub.s32 %s1161_s24, %s1516_s29 }
  0x14   : > { %p178_p10 = scmp.eq.s32.totalorder %s805_s27, 3  ;;  %s39_s10 = sor.u32 %s38_s30, %s37_s9 }
  0x15   : > { %s1495_s8 = scalar_select %p1269_p9, 1, 0 }
  0x16   : > { %s42_s11 = sadd.s32 1, %s1145_s20  ;;  %p40_p11 = scmp.eq.s32.totalorder %s39_s10, 0 }
  0x17   : > { %p1276_p12 = por %p178_p10, %p55_p5  ;;  %p807_p13 = scmp.ge.s32.totalorder %s1165_s25, 4 }
  0x18   : > { %s1281_s13 = scalar_select %p40_p11, %s1145_s20, %s42_s11  }
  0x19   : > { %s1496_s12 = scalar_select %p1276_p12, 1, 0 }
  0x1a   : > { %1497 = sst [smem:[#allocation12_spill]] %s1281_s13  ;;  %203 = sbr.rel (%p807_p13) target bundleno = 68 (0x44), region = 28 }
  0x1b   : > { %s1285_s14 = sand.u32 (!%p807_p13), 1, %s1145_s20   ;;  %s940_s15 = smul.u32 (!%p807_p13), 36, %s1161_s24 }
  0x1c   : > { %s939_s16 = smul.u32 (!%p807_p13), 72, %s1285_s14  ;;  %s1498_s0 = sld [smem:[#allocation13_spill]] (!%p807_p13) }
  0x1d   : > { %s216_s17 = sadd.s32 (!%p807_p13), %s1157_s23, %s940_s15  ;;  %s208_s29 = scalar_lea.sflag (!%p807_p13), [#allocation3], %s1285_s14 }
  0x1e   : > { %s808_s26 = sshll.u32 (!%p807_p13), %s216_s17, 6  ;;  %s211_s10 = scalar_lea.vmem (!%p807_p13), [#allocation2], %s939_s16 }
  0x1f   : > { %s219_s11 = sshll.u32 (!%p807_p13), %s211_s10, 4  ;;  %s1295_s11 = int_to_ptr.vmem [resolvable:$true] %s219_s11 }
  0x22   : > { %s1293_s9 = scalar_lea.hbm %s1498_s0, %s808_s26  ;;  %s1043_s27 = scalar_lea.hbm %s1498_s0, 4608 }
  0x23   : > { %s1039_s28 = scalar_lea.hbm %s1293_s9, 1152  ;;  %p1044_p4 = scmp.lt.u32.totalorder %s1293_s9, %s1498_s0 }
  0x24   : > { %p1040_p0 = scmp.ne.s32.totalorder %s1293_s9, %s1039_s28  ;;  %p1045_p5 = scmp.lt.u32.totalorder %s1043_s27, %s1039_s28 }
  0x25   : > { %p1047_p7 = scmp.lt.u32.totalorder %s1039_s28, %s1293_s9 }
  0x26   : > { %p1041_p1 = pnand %p1040_p0, %p1257_p3  ;;  %p1046_p6 = por %p1045_p5, %p1044_p4 }
  0x28   : > { %p1042_p2 = pneg %p1041_p1  ;;  %p1048_p10 = por %p1047_p7, %p1046_p6 }
  0x2a   : > { %p1049_p11 = pnand %p1048_p10, %p1042_p2 }
  0x2c   : > { %1052 = shalt.err (!%p1049_p11)
}
  0x2d   : > { %s1053_s16 = scalar_lea.vmem %s1295_s11, 1152  ;;  %s1167_s10 = smov [#allocation2]  }
  0x2e   : > { %p1054_p13 = scmp.ne.s32.totalorder %s1295_s11, %s1053_s16  ;;  %s1057_s15 = sshll.u32 %s1167_s10, 4  ;;  %s1058_s15 = int_to_ptr.vmem [resolvable:$false] %s1057_s15 }
  0x2f   : > { %s1059_s17 = scalar_lea.vmem %s1058_s15, 2304  ;;  %p1060_p12 = scmp.lt.s32.totalorder %s1295_s11, %s1058_s15 }
  0x30   : > { %p1055_p0 = pnand %p1054_p13, %p1257_p3  ;;  %p1061_p9 = scmp.lt.s32.totalorder %s1059_s17, %s1053_s16 }
  0x32   : > { %p1056_p1 = pneg %p1055_p0  ;;  %p1062_p4 = por %p1061_p9, %p1060_p12 }
  0x34   : > { %p1063_p5 = pnand %p1062_p4, %p1056_p1 }
  0x36   : > { %1066 = shalt.err (!%p1063_p5)
}
  0x37   : > { %s1168_s28 = smov 128   ;;  %s1169_s27 = smov 64  }
  0x38   : > { %s1170_s26 = smov 4   ;;  %228 = sbr.rel (!%p1257_p3) target bundleno = 68 (0x44), region = 36 }
  0x39   : > { %945 = dma.hbm_to_vmem [thread:$0]  (%p1257_p3), %s1293_s9, 1152, %s1295_s11, %s208_s29, %s1168_s28, %s1169_s27, %s1170_s26  }
  0x3a   : > { %s941_s30 = smul.u32 (%p1257_p3), 20, %s1285_s14 }
  0x3b   : > { %s942_s16 = smul.u32 (%p1257_p3), 10, %s1161_s24 }
  0x3c   : > { %s232_s20 = scalar_lea.vmem (%p1257_p3), [#allocation5], %s941_s30 }
  0x3d   : > { %s234_s10 = sadd.s32 (%p1257_p3), %s1157_s23, %s942_s16 }
  0x3e   : > { %s809_s15 = sshll.u32 (%p1257_p3), %s234_s10, 2 }
  0x3f   : > { %s236_s13 = scalar_lea.vmem %s1480_s1, %s809_s15 }
  0x40   : > { %v252_v0 = vld [vmem:[%s236_s13] sm:$0xf]  ;;  %v254_v1 = vld [vmem:[%s236_s13 + $0x8] sm:$0xf]  ;;  %v256_v2 = vld [vmem:[%s236_s13 + $0x10] sm:$0xf] }
  0x41   : > { %253 = vst [vmem:[%s232_s20] sm:$0xf] %v252_v0  ;;  %255 = vst [vmem:[%s232_s20 + $0x4] sm:$0xf] %v254_v1  ;;  %v258_v3 = vld [vmem:[%s236_s13 + $0x18] sm:$0xf] }
  0x42   : > { %257 = vst [vmem:[%s232_s20 + $0x8] sm:$0xf] %v256_v2  ;;  %v260_v4 = vld [vmem:[%s236_s13 + $0x20] sm:$0xf]  ;;  %259 = vst [vmem:[%s232_s20 + $0xc] sm:$0xf] %v258_v3 }
  0x43   : > { %261 = vst [vmem:[%s232_s20 + $0x10] sm:$0xf] %v260_v4 }
  0x44 PF: > { %p810_p3 = scmp.ge.s32.totalorder %s1165_s25, 1  ;;  %p293_p9 = scmp.lt.s32.totalorder %s1165_s25, 5 }
  0x46   : > { %p294_p12 = pnand %p810_p3, %p293_p9 }
  0x47   : > { %s1332_s0 = sand.u32 (!%p294_p12), 1, %s1141_s19  }
  0x48   : > { %297 = sbr.rel (%p294_p12) target bundleno = 608 (0x260), region = 77  ;;  %s300_s6 = scalar_lea.sflag (!%p294_p12), [#allocation3], %s1332_s0 }
  0x49   : > { %s943_s29 = smul.u32 (!%p294_p12), 72, %s1332_s0 }
  0x4b   : > { %s1336_s14 = scalar_lea.vmem (!%p294_p12), [#allocation2], %s943_s29 }
  0x4f   : > { %1128 = dma.done.wait (%p1265_p8), %s300_s6, 1152  }
  0x50   : > { %1130 = vsyncadd (%p1265_p8), %s300_s6, 4294966144  ;;  %s944_s20 = smul.u32 20, %s1332_s0  ;;  %v1171_v5 = vmov 0.0   ;;  %vm1172_vm0 = vmmov 0   ;;  %vm489_vm1 = vcmask 1041408   ;;  %v1028_v10 = vld [vmem:[%s1481_s2] sm:$0xff]  }
  0x51   : > { %897 = vmatprep.subr.bf16.mxu0 %v1171_v5  ;;  %903 = vmatprep.mubr.msk.bf16.mxu0 %vm1172_vm0, %v1171_v5  ;;  %vm461_vm2 = vcmask 293888   ;;  %v1029_v11 = vld [vmem:[%s1481_s2 + $0x8] sm:$0xff]   ;;  %v1030_v12 = vld [vmem:[%s1481_s2 + $0x10] sm:$0xff]   ;;  %v1031_v13 = vld [vmem:[%s1481_s2 + $0x18] sm:$0xff]   ;;  %v1173_v19 = vmov 0   ;;  %vm638_vm3 = vcmask 130048  }
  0x52   : > { %s311_s13 = scalar_lea.vmem [#allocation5], %s944_s20  ;;  %v1032_v14 = vld [vmem:[%s1481_s2 + $0x20] sm:$0xff]   ;;  %v1033_v15 = vld [vmem:[%s1481_s2 + $0x28] sm:$0xff]   ;;  %v1034_v16 = vld [vmem:[%s1481_s2 + $0x30] sm:$0xff]   ;;  %642 = vmatprep.subr.bf16.mxu1 %v1173_v19  ;;  %1024 = vset.pattern.permute.xlu0 %v1173_v19  ;;  %s837_s16 = sshll.u32 %s1153_s22, 1 }
  0x53   : > { %v1025_v6 = vld [vmem:[%s311_s13] sm:$0xff]   ;;  %v1026_v7 = vld [vmem:[%s311_s13 + $0x8] sm:$0xff]   ;;  %v1027_v8 = vld [vmem:[%s311_s13 + $0x10] ss:$0 sps:$4 sm:$0x33]   ;;  %s695_s10 = sadd.s32 %s1149_s21, %s837_s16  ;;  %s684_s21 = scalar_lea.sflag [#allocation4], %s1332_s0 }
  0x54   : > { %898 = vmatpush3.bf16.msra.mxu0 %v1025_v6  ;;  %v491_v9 = vsel %vm489_vm1, %v1027_v8, 0  ;;  %v1035_v17 = vld [vmem:[%s1481_s2 + $0x38] sm:$0xff]   ;;  %v1036_v18 = vld [vmem:[%s1481_s2 + $0x40] sm:$0xff]   ;;  %v877_v32 = vld [vmem:[%s1336_s14 + $0x8] sm:$0xff]   ;;  %s838_s15 = sshll.u32 %s695_s10, 7  ;;  %p1499_p2 = scmp.ne.s32.totalorder %s1495_s8, 0 }
  0x55   : > { %899 = vmatprep.subr.bf16.mxu0 %v1171_v5  ;;  %v1393_v20 = vld [vmem:[%s1482_s3] sm:$0xff]  ;;  %v847_v34 = vunpack.c.l.bf16 %v877_v32  ;;  %v848_v35 = vunpack.c.h.bf16 %v877_v32  ;;  %v878_v42 = vld [vmem:[%s1336_s14 + $0x10] sm:$0xff]   ;;  %v881_v8 = vld [vmem:[%s1336_s14 + $0x28] sm:$0xff]   ;;  %s1425_s13 = scalar_lea.hbm %s1484_s5, %s838_s15  ;;  %s1174_s9 = smov [#allocation6]  }
  0x56   : > { %v834_v21 = vcombine.high %v1393_v20, %v1393_v20  ;;  %v626_v22 = vld [vmem:[%s1483_s4] sm:$0xff]  ;;  %v851_v44 = vunpack.c.l.bf16 %v878_v42  ;;  %v852_v45 = vunpack.c.h.bf16 %v878_v42  ;;  %s1071_s7 = sshll.u32 %s1174_s9, 4  ;;  %s1072_s7 = int_to_ptr.vmem [resolvable:$false] %s1071_s7 }
  0x57   : > { %629 = vperm.xlu0 %1024, %v626_v22   ;;  %v842_v23 = vld [vmem:[%s1336_s14] sm:$0xff]   ;;  %v879_v52 = vld [vmem:[%s1336_s14 + $0x18] sm:$0xff]   ;;  %s1073_s11 = scalar_lea.vmem %s1072_s7, 256 }
  0x58   : > { %900 = vmatpush3.bf16.msra.mxu0 %v1026_v7  ;;  %835 = vmatprep.mubr.msk.bf16.mxu1 %vm638_vm3, %v834_v21  ;;  %v843_v24 = vunpack.c.l.bf16 %v842_v23  ;;  %v844_v25 = vunpack.c.h.bf16 %v842_v23  ;;  %v855_v54 = vunpack.c.l.bf16 %v879_v52  ;;  %v856_v55 = vunpack.c.h.bf16 %v879_v52  ;;  %v880_v62 = vld [vmem:[%s1336_s14 + $0x20] sm:$0xff]  }
  0x59   : > { %901 = vmatprep.subr.bf16.mxu0 %v1171_v5  ;;  %v859_v0 = vunpack.c.l.bf16 %v880_v62  ;;  %v860_v1 = vunpack.c.h.bf16 %v880_v62 }
  0x5c   : > { %902 = vmatpush3.bf16.msra.mxu0 %v491_v9 }
  0x5f   : > { %904 = vmatmul.mubr.msk.bf16.vlgmr.msra.gmra.mrb[0].mxu0 %vm461_vm2, %v1028_v10  ;;  %v863_v10 = vunpack.c.l.bf16 %v881_v8 }
  0x60   : > { %907 = vmatprep.mubr.msk.bf16.mxu0 %vm1172_vm0, %v1171_v5 }
  0x67   : > { %908 = vmatmul.mubr.msk.bf16.gmra.mrb[4].mxu0 %vm461_vm2, %v1029_v11  ;;  %v864_v11 = vunpack.c.h.bf16 %v881_v8 }
  0x68   : > { %911 = vmatprep.mubr.msk.bf16.mxu0 %vm1172_vm0, %v1171_v5 }
  0x6f   : > { %912 = vmatmul.mubr.msk.bf16.gmra.mrb[8].mxu0 %vm461_vm2, %v1030_v12 }
  0x70   : > { %915 = vmatprep.mubr.msk.bf16.mxu0 %vm1172_vm0, %v1171_v5 }
  0x77   : > { %916 = vmatmul.mubr.msk.bf16.gmra.mrb[12].mxu0 %vm461_vm2, %v1031_v13 }
  0x78   : > { %919 = vmatprep.mubr.msk.bf16.mxu0 %vm1172_vm0, %v1171_v5 }
  0x7f   : > { %920 = vmatmul.mubr.msk.bf16.gmra.mrb[16].mxu0 %vm461_vm2, %v1032_v14 }
  0x80   : > { %923 = vmatprep.mubr.msk.bf16.mxu0 %vm1172_vm0, %v1171_v5 }
  0x87   : > { %924 = vmatmul.mubr.msk.bf16.gmra.mrb[20].mxu0 %vm461_vm2, %v1033_v15 }
  0x88   : > { %927 = vmatprep.mubr.msk.bf16.mxu0 %vm1172_vm0, %v1171_v5 }
  0x8f   : > { %928 = vmatmul.mubr.msk.bf16.gmra.mrb[24].mxu0 %vm461_vm2, %v1034_v16 }
  0x90   : > { %931 = vmatprep.mubr.msk.bf16.mxu0 %vm1172_vm0, %v1171_v5 }
  0x97   : > { %932 = vmatmul.mubr.msk.bf16.gmra.mrb[28].mxu0 %vm461_vm2, %v1035_v17 }
  0x98   : > { %935 = vmatprep.mubr.msk.bf16.mxu0 %vm1172_vm0, %v1171_v5 }
  0x9f   : > { %936 = vmatmul.mubr.msk.bf16.gmra.mrb[32].mxu0 %vm461_vm2, %v1036_v18  ;;  %v882_v18 = vld [vmem:[%s1336_s14 + $0x30] sm:$0xff]  }
  0xa0   : > { %v867_v22 = vunpack.c.l.bf16 %v882_v18  ;;  %v868_v23 = vunpack.c.h.bf16 %v882_v18 }
  0xd6   : > { %v630_v52 = vpop.permute.xlu0 %629 }
 0x132   : > { %v527_v26 = vpop.f32.mrb[0].mxu0 }
 0x133   : > { %v905_v27 = vpop.f32.mrb[1].mxu0  ;;  %v598_v29 = vmul.f32 %v843_v24, %v527_v26 }
 0x134   : > { %v530_v28 = vpop.f32.mrb[2].mxu0 }
 0x135   : > { %v599_v30 = vmul.f32 %v844_v25, %v530_v28  ;;  %v906_v31 = vpop.f32.mrb[3].mxu0 }
 0x137   : > { %v616_v33 = vpack.c.bf16 %v599_v30, %v598_v29  ;;  %v883_v30 = vld [vmem:[%s1336_s14 + $0x38] sm:$0xff]  }
 0x138   : > { %v871_v32 = vunpack.c.l.bf16 %v883_v30 }
 0x139   : > { %643 = vmatpush1.bf16.msra.mxu1 %v616_v33  ;;  %v872_v33 = vunpack.c.h.bf16 %v883_v30 }
 0x13a   : > { %v535_v36 = vpop.f32.mrb[4].mxu0  ;;  %644 = vmatprep.subr.bf16.mxu1 %v1173_v19 }
 0x13b   : > { %v909_v37 = vpop.f32.mrb[5].mxu0  ;;  %v600_v39 = vmul.f32 %v847_v34, %v535_v36 }
 0x13c   : > { %v538_v38 = vpop.f32.mrb[6].mxu0 }
 0x13d   : > { %v601_v40 = vmul.f32 %v848_v35, %v538_v38  ;;  %v910_v41 = vpop.f32.mrb[7].mxu0 }
 0x13f   : > { %v617_v43 = vpack.c.bf16 %v601_v40, %v600_v39  ;;  %v884_v40 = vld [vmem:[%s1336_s14 + $0x40] sm:$0xff]   ;;  %s811_s14 = sshll.u32 %s1332_s0, 3 }
 0x140   : > { %v875_v42 = vunpack.c.l.bf16 %v884_v40  ;;  %s340_s17 = scalar_lea.vmem [#allocation6], %s811_s14 }
 0x141   : > { %645 = vmatpush1.bf16.msra.mxu1 %v617_v43  ;;  %v876_v43 = vunpack.c.h.bf16 %v884_v40  ;;  %s699_s29 = sshll.u32 %s340_s17, 4  ;;  %s1427_s29 = int_to_ptr.vmem [resolvable:$true] %s699_s29 }
 0x142   : > { %v543_v46 = vpop.f32.mrb[8].mxu0  ;;  %646 = vmatprep.subr.bf16.mxu1 %v1173_v19  ;;  %s1067_s22 = scalar_lea.vmem %s1427_s29, 128  ;;  %p1074_p10 = scmp.lt.s32.totalorder %s1427_s29, %s1072_s7 }
 0x143   : > { %v913_v47 = vpop.f32.mrb[9].mxu0  ;;  %v602_v49 = vmul.f32 %v851_v44, %v543_v46  ;;  %p1068_p8 = scmp.ne.s32.totalorder %s1427_s29, %s1067_s22  ;;  %p1075_p11 = scmp.lt.s32.totalorder %s1073_s11, %s1067_s22 }
 0x144   : > { %v546_v48 = vpop.f32.mrb[10].mxu0 }
 0x145   : > { %v603_v50 = vmul.f32 %v852_v45, %v546_v48  ;;  %v914_v51 = vpop.f32.mrb[11].mxu0  ;;  %p1069_p6 = pnand %p1068_p8, %p1499_p2  ;;  %p1076_p13 = por %p1075_p11, %p1074_p10 }
 0x146   : > { %v833_v51 = vcombine.low %v1393_v20, %v1393_v20 }
 0x147   : > { %v618_v53 = vpack.c.bf16 %v603_v50, %v602_v49  ;;  %p1070_p7 = pneg %p1069_p6 }
 0x149   : > { %647 = vmatpush1.bf16.msra.mxu1 %v618_v53  ;;  %p1077_p0 = pnand %p1076_p13, %p1070_p7 }
 0x14a   : > { %v551_v56 = vpop.f32.mrb[12].mxu0  ;;  %648 = vmatprep.subr.bf16.mxu1 %v1173_v19 }
 0x14b   : > { %v917_v57 = vpop.f32.mrb[13].mxu0  ;;  %v604_v59 = vmul.f32 %v855_v54, %v551_v56 }
 0x14c   : > { %v554_v58 = vpop.f32.mrb[14].mxu0 }
 0x14d   : > { %v605_v60 = vmul.f32 %v856_v55, %v554_v58  ;;  %v918_v61 = vpop.f32.mrb[15].mxu0 }
 0x14f   : > { %v619_v63 = vpack.c.bf16 %v605_v60, %v604_v59 }
 0x151   : > { %649 = vmatpush1.bf16.msra.mxu1 %v619_v63 }
 0x152   : > { %v559_v2 = vpop.f32.mrb[16].mxu0  ;;  %650 = vmatprep.subr.bf16.mxu1 %v1173_v19 }
 0x153   : > { %v921_v3 = vpop.f32.mrb[17].mxu0  ;;  %v606_v5 = vmul.f32 %v859_v0, %v559_v2 }
 0x154   : > { %v562_v4 = vpop.f32.mrb[18].mxu0 }
 0x155   : > { %v607_v6 = vmul.f32 %v860_v1, %v562_v4  ;;  %v922_v7 = vpop.f32.mrb[19].mxu0 }
 0x157   : > { %v620_v9 = vpack.c.bf16 %v607_v6, %v606_v5 }
 0x159   : > { %651 = vmatpush1.bf16.msra.mxu1 %v620_v9 }
 0x15a   : > { %v567_v12 = vpop.f32.mrb[20].mxu0  ;;  %652 = vmatprep.subr.bf16.mxu1 %v1173_v19 }
 0x15b   : > { %v925_v13 = vpop.f32.mrb[21].mxu0  ;;  %v608_v15 = vmul.f32 %v863_v10, %v567_v12 }
 0x15c   : > { %v570_v14 = vpop.f32.mrb[22].mxu0 }
 0x15d   : > { %v609_v16 = vmul.f32 %v864_v11, %v570_v14  ;;  %v926_v17 = vpop.f32.mrb[23].mxu0 }
 0x15f   : > { %v621_v21 = vpack.c.bf16 %v609_v16, %v608_v15 }
 0x161   : > { %653 = vmatpush1.bf16.msra.mxu1 %v621_v21 }
 0x162   : > { %v575_v24 = vpop.f32.mrb[24].mxu0  ;;  %654 = vmatprep.subr.bf16.mxu1 %v1173_v19 }
 0x163   : > { %v929_v25 = vpop.f32.mrb[25].mxu0  ;;  %v610_v27 = vmul.f32 %v867_v22, %v575_v24 }
 0x164   : > { %v578_v26 = vpop.f32.mrb[26].mxu0 }
 0x165   : > { %v611_v28 = vmul.f32 %v868_v23, %v578_v26  ;;  %v930_v29 = vpop.f32.mrb[27].mxu0 }
 0x167   : > { %v622_v31 = vpack.c.bf16 %v611_v28, %v610_v27 }
 0x169   : > { %655 = vmatpush1.bf16.msra.mxu1 %v622_v31 }
 0x16a   : > { %v583_v34 = vpop.f32.mrb[28].mxu0  ;;  %656 = vmatprep.subr.bf16.mxu1 %v1173_v19 }
 0x16b   : > { %v933_v35 = vpop.f32.mrb[29].mxu0  ;;  %v612_v37 = vmul.f32 %v871_v32, %v583_v34 }
 0x16c   : > { %v586_v36 = vpop.f32.mrb[30].mxu0 }
 0x16d   : > { %v613_v38 = vmul.f32 %v872_v33, %v586_v36  ;;  %v934_v39 = vpop.f32.mrb[31].mxu0 }
 0x16f   : > { %v623_v41 = vpack.c.bf16 %v613_v38, %v612_v37 }
 0x171   : > { %657 = vmatpush1.bf16.msra.mxu1 %v623_v41 }
 0x172   : > { %v591_v44 = vpop.f32.mrb[32].mxu0  ;;  %658 = vmatprep.subr.bf16.mxu1 %v1173_v19 }
 0x173   : > { %v937_v45 = vpop.f32.mrb[33].mxu0  ;;  %v614_v47 = vmul.f32 %v875_v42, %v591_v44 }
 0x174   : > { %v594_v46 = vpop.f32.mrb[34].mxu0 }
 0x175   : > { %v615_v48 = vmul.f32 %v876_v43, %v594_v46  ;;  %v938_v49 = vpop.f32.mrb[35].mxu0 }
 0x177   : > { %v624_v50 = vpack.c.bf16 %v615_v48, %v614_v47 }
 0x179   : > { %659 = vmatpush1.bf16.msra.mxu1 %v624_v50 }
 0x17c   : > { %675 = vmatmul.mubr.bf16.vlgmr.msra.gmra.mrb[0].mxu1 %v833_v51 }
 0x24f   : > { %v676_v19 = vpop.f32.mrb[0].mxu1 }
 0x250   : > { %v677_v53 = vadd.f32 %v676_v19, %v630_v52  ;;  %v678_v54 = vpop.f32.mrb[1].mxu1 }
 0x251   : > { %v679_v20 = vpop.f32.mrb[2].mxu1 }
 0x252   : > { %682 = vst [vmem:[%s340_s17] sm:$0xff] %v677_v53  ;;  %v680_v55 = vpop.f32.mrb[3].mxu1 }
 0x253   : > { %1080 = shalt.err (!%p1077_p0)
}
 0x254   : > { %s1081_s0 = scalar_lea.hbm %s1425_s13, 128  ;;  %s1085_s26 = scalar_lea.hbm %s1484_s5, 512 }
 0x255   : > { %p1082_p1 = scmp.ne.s32.totalorder %s1425_s13, %s1081_s0  ;;  %p1086_p3 = scmp.lt.u32.totalorder %s1425_s13, %s1484_s5 }
 0x256   : > { %p1087_p9 = scmp.lt.u32.totalorder %s1085_s26, %s1081_s0  ;;  %p1089_p8 = scmp.lt.u32.totalorder %s1081_s0, %s1425_s13 }
 0x257   : > { %p1083_p4 = pnand %p1082_p1, %p1499_p2 }
 0x258   : > { %p1088_p12 = por %p1087_p9, %p1086_p3 }
 0x259   : > { %p1084_p5 = pneg %p1083_p4 }
 0x25a   : > { %p1090_p6 = por %p1089_p8, %p1088_p12 }
 0x25c   : > { %p1091_p7 = pnand %p1090_p6, %p1084_p5 }
 0x25e   : > { %1094 = shalt.err (!%p1091_p7)
}
 0x25f   : > { %947 = dma.vmem_to_hbm [thread:$0]  (%p1499_p2), %s1427_s29, 128, %s1425_s13, %s684_s21  }
 0x260 PF: > { %p953_p10 = scmp.ge.s32.totalorder %s1165_s25, 2  ;;  %s711_s16 = sand.u32 1, %s1137_s18  }
 0x261   : > { %p1500_p11 = scmp.ne.s32.totalorder %s1496_s12, 0  ;;  %s712_s10 = scalar_lea.sflag [#allocation4], %s711_s16 }
 0x263   : > { %p950_p13 = pnand %p953_p10, %p1500_p11 }
 0x265   : > { %1132 = dma.done.wait (!%p950_p13), %s712_s10, 128  }
 0x266   : > { %1134 = vsyncadd (!%p950_p13), %s712_s10, 4294967168  ;;  %s21_s25 = sadd.s32 1, %s1165_s25   ;;  %s1501_s15 = sld [smem:[#allocation9_spill]] }
 0x267   : > { %p18_p0 = scmp.ge.s32.totalorder %s21_s25, 6   ;;  %s1502_s20 = sld [smem:[#allocation12_spill]] }
 0x268   : > { %s1503_s8 = sld [smem:[#allocation10_spill]]  ;;  %s1504_s17 = sld [smem:[#allocation11_spill]] }
 0x269   : > { %s1505_s18 = smov %s1141_s19  ;;  %s1507_s21 = smov %s1157_s23 }
 0x26a   : > { %s1508_s22 = smov %s1161_s24  ;;  %20 = sbr.rel (!%p18_p0) target bundleno = 9 (0x9), region = 134 }
 0x26c   : > { %s1506_s19 = smov %s1501_s15 }
 0x26e   : > { %s1509_s23 = smov %s1503_s8  ;;  %s1510_s24 = smov %s1504_s17 }
 0x271   :  { %717 = vsyncpa [#allocation3], 1 }
 0x272   :  { %719 = vsyncpa [#allocation3 + $0x1], 1 }
 0x273   :  { %720 = vsyncpa [#allocation4], 1 }
 0x274   :  { %722 = vsyncpa [#allocation4 + $0x1], 1 }

</bundles_post_ra>
